<compile_context>
chip_gen: v7x
topology: tpu7x:2x2x1
jax: 0.10.0
libtpu: 0.0.40
codegen_flags: <defaults>
</compile_context>

<pallas_src>
import jax
import jax.numpy as jnp
import numpy as np
from jax.experimental import pallas as pl
from jax.experimental.pallas import tpu as pltpu


def _grouped_linear_kernel(x_ref, w_ref, b_ref, o_ref):
    # x_ref: (tm, 3g), w_ref: (3g, ng) f32, b_ref: (1, ng) f32, o_ref: (tm, ng)
    x = x_ref[...].astype(jnp.float32)
    acc = jnp.dot(x, w_ref[...], preferred_element_type=jnp.float32)
    o_ref[...] = (acc + b_ref[...]).astype(o_ref.dtype)


def rgb_to_model(x, weight, bias, *, vmem_budget_bytes=24 * 1024 * 1024, max_tm=8192):
    """y = x @ weight.T + bias on the trailing dim.

    x: (..., 3); weight: (d_model, 3); bias: (d_model,). Returns (..., d_model).
    """
    d_model = weight.shape[0]
    lead_shape = x.shape[:-1]
    m = 1
    for s in lead_shape:
        m *= s

    out_dtype = x.dtype
    itemsize = jnp.dtype(out_dtype).itemsize

    # Parameters stay in f32: the add happens in the f32 accumulator anyway,
    # so this avoids double rounding when x (and the output) are bf16.
    w_t = weight.astype(jnp.float32).T          # (3, d_model)
    b_f32 = bias.astype(jnp.float32)

    x_flat = x.reshape(m, 3)                    # zero-cost view if x contiguous

    # Pixel-group factor: group 8 pixels per row only when d_model alone would
    # give a < 128-lane output (masked-store cliff); otherwise skip grouping
    # (it would just inflate MXU FLOPs by 8x and grow the weight by 64x).
    g = 1 if d_model >= 128 else 8
    m_main = (m // g) * g                       # pixels covered by the kernel
    m_tail = m - m_main                         # <= g-1 pixels, handled in JAX

    if m_main == 0:
        # Degenerate tiny input: plain JAX, no kernel launch.
        y = (x_flat.astype(jnp.float32) @ w_t + b_f32).astype(out_dtype)
        return y.reshape(*lead_shape, d_model)

    m_g = m_main // g                           # grouped rows
    kg = 3 * g                                  # grouped input width
    ng = d_model * g                            # grouped (lane-dense) output width

    x2d = x_flat[:m_main].reshape(m_g, kg)      # contiguous -> zero-cost view

    if g > 1:
        # Block-diagonal replicated weight: block j maps input cols [3j,3j+3)
        # to output cols [d_model*j, d_model*(j+1)).
        w_bd = jnp.kron(jnp.eye(g, dtype=jnp.float32), w_t)     # (3g, ng)
        b_bd = jnp.tile(b_f32, g).reshape(1, ng)
    else:
        w_bd = w_t                                               # (3, d_model)
        b_bd = b_f32.reshape(1, ng)

    # --- Tile sizing from a VMEM budget -------------------------------------
    # VMEM footprint per buffered tile: input rows pad to 128 lanes, output is
    # ng lanes, both double-buffered -> 2*tm*(128+ng)*itemsize.
    tm = vmem_budget_bytes // (2 * (ng + 128) * itemsize)
    tm = max(8, min(int(tm), int(max_tm)))
    if tm >= m_g:
        tm = m_g                                # full extent (any size allowed)
    else:
        tm = max(8, (tm // 8) * 8)              # sublane-aligned partial tiles

    grid = (pl.cdiv(m_g, tm),)                  # ragged final block masked by Pallas

    buf_bytes = 2 * tm * (128 + ng) * itemsize
    const_bytes = 2 * (w_bd.size + b_bd.size) * 4
    vmem_limit = int(min(max(buf_bytes + const_bytes + (4 << 20), 16 << 20), 100 << 20))

    cost = pl.CostEstimate(
        flops=2 * m_g * kg * ng,                # executed (g-inflated) FLOPs
        transcendentals=0,
        bytes_accessed=(m_main * 3 + m_main * d_model) * itemsize
        + (w_bd.size + b_bd.size) * 4,
    )

    out = pl.pallas_call(
        _grouped_linear_kernel,
        out_shape=jax.ShapeDtypeStruct((m_g, ng), out_dtype),
        grid_spec=pltpu.PrefetchScalarGridSpec(
            num_scalar_prefetch=0,
            grid=grid,
            in_specs=[
                pl.BlockSpec((tm, kg), lambda i: (i, 0)),   # grouped pixel tile
                pl.BlockSpec((kg, ng), lambda i: (0, 0)),   # block-diag W^T (constant)
                pl.BlockSpec((1, ng), lambda i: (0, 0)),    # tiled bias row (constant)
            ],
            out_specs=pl.BlockSpec((tm, ng), lambda i: (i, 0)),
        ),
        compiler_params=pltpu.CompilerParams(
            dimension_semantics=("parallel",),
            vmem_limit_bytes=vmem_limit,
        ),
        cost_estimate=cost,
    )(x2d, w_bd, b_bd)

    # (m_g, d_model*g) -> (m_main, d_model) is a zero-cost contiguous reshape.
    y_main = out.reshape(m_main, d_model)
    if m_tail:
        # <= 7 leftover pixels: plain JAX, essentially free.
        y_tail = (x_flat[m_main:].astype(jnp.float32) @ w_t + b_f32).astype(out_dtype)
        y = jnp.concatenate([y_main, y_tail], axis=0)
    else:
        y = y_main
    return y.reshape(*lead_shape, d_model)


def _check(y, x, w, b, tol=2e-2):
    # High-precision host reference (avoids TPU default bf16-pass matmul in the
    # reference itself); loose-ish tolerance covers whichever MXU precision the
    # kernel's f32 dot lowers to while still catching any layout/permute bug.
    y64 = np.asarray(y, np.float64)
    ref = np.asarray(x, np.float64) @ np.asarray(w, np.float64).T + np.asarray(b, np.float64)
    err = np.max(np.abs(y64 - ref))
    assert y.shape == ref.shape, (y.shape, ref.shape)
    assert err < tol, f"max abs error {err}"


if __name__ == "__main__":
    key = jax.random.PRNGKey(0)
    kx, kw, kb = jax.random.split(key, 3)

    def make_params(kw, kb, d_model, dtype=jnp.float32):
        bound = 1.0 / float(np.sqrt(3.0))
        w = jax.random.uniform(kw, (d_model, 3), dtype, -bound, bound)
        b = jax.random.uniform(kb, (d_model,), dtype, -bound, bound)
        return w, b

    # Case 1: small RGB image batch (B=2, H=16, W=16, 3), d_model=32 -> grouped
    # g=8 path, single full tile.
    d_model = 32
    x = jax.random.normal(kx, (2, 16, 16, 3), dtype=jnp.float32)
    w, b = make_params(kw, kb, d_model)
    y = jax.block_until_ready(rgb_to_model(x, w, b))
    assert y.shape == (2, 16, 16, d_model)
    _check(y, x, w, b)

    # Case 2: M=451 pixels (not divisible by 8 -> 3-pixel JAX tail) with a
    # small forced tile (tm=16, m_g=56 -> ragged final grid block).
    x2 = jax.random.normal(jax.random.fold_in(kx, 1), (11, 41, 3), dtype=jnp.float32)
    y2 = jax.block_until_ready(rgb_to_model(x2, w, b, max_tm=16))
    assert y2.shape == (11, 41, d_model)
    _check(y2, x2, w, b)

    # Case 3: d_model=128 -> ungrouped (g=1) lane-dense path.
    d2 = 128
    w2, b2 = make_params(jax.random.fold_in(kw, 1), jax.random.fold_in(kb, 1), d2)
    x3 = jax.random.normal(jax.random.fold_in(kx, 2), (4, 8, 8, 3), dtype=jnp.float32)
    y3 = jax.block_until_ready(rgb_to_model(x3, w2, b2))
    assert y3.shape == (4, 8, 8, d2)
    _check(y3, x3, w2, b2)

    print("KERNEL_OK")
</pallas_src>

<mosaic_0001>
module attributes {stable_mosaic.version = 11 : i64} {
  func.func @_grouped_linear_kernel(%arg0: i32, %arg1: memref<64x24xf32, #tpu.memory_space<vmem>>, %arg2: memref<24x256xf32, #tpu.memory_space<vmem>>, %arg3: memref<1x256xf32, #tpu.memory_space<vmem>>, %arg4: memref<64x256xf32, #tpu.memory_space<vmem>>) attributes {dimension_semantics = [#tpu.dimension_semantics<parallel>], iteration_bounds = array<i64: 1>, scalar_prefetch = 0 : i64, scratch_operands = 0 : i64, tpu.core_type = #tpu.core_type<tc>, window_params = [{transform_indices = @transform_0, window_bounds = array<i64: 64, 24>}, {pipeline_mode = #tpu.pipeline_mode<synchronous>, transform_indices = @transform_1, window_bounds = array<i64: 24, 256>}, {pipeline_mode = #tpu.pipeline_mode<synchronous>, transform_indices = @transform_2, window_bounds = array<i64: 1, 256>}, {transform_indices = @transform_3, window_bounds = array<i64: 64, 256>}]} {
    %c0 = arith.constant 0 : index
    %c0_0 = arith.constant 0 : index
    %0 = vector.load %arg1[%c0, %c0_0] : memref<64x24xf32, #tpu.memory_space<vmem>>, vector<64x24xf32>
    %c0_1 = arith.constant 0 : index
    %c0_2 = arith.constant 0 : index
    %1 = vector.load %arg2[%c0_1, %c0_2] : memref<24x256xf32, #tpu.memory_space<vmem>>, vector<24x256xf32>
    %cst = arith.constant dense<0.000000e+00> : vector<64x256xf32>
    %2 = tpu.matmul %0, %1, %cst {dimension_numbers = #tpu.dot_dimension_numbers<[1], [0], [0], [1], [0, 0, 1, 1], [], []>} : vector<64x24xf32>, vector<24x256xf32>, vector<64x256xf32> -> vector<64x256xf32>
    %c0_3 = arith.constant 0 : index
    %c0_4 = arith.constant 0 : index
    %3 = vector.load %arg3[%c0_3, %c0_4] : memref<1x256xf32, #tpu.memory_space<vmem>>, vector<1x256xf32>
    %4 = vector.broadcast %3 : vector<1x256xf32> to vector<64x256xf32>
    %5 = arith.addf %2, %4 : vector<64x256xf32>
    %c0_5 = arith.constant 0 : index
    %c0_6 = arith.constant 0 : index
    %6 = vector.load %arg4[%c0_5, %c0_6] : memref<64x256xf32, #tpu.memory_space<vmem>>, vector<64x256xf32>
    tpu.vector_store %arg4[%c0_5, %c0_6], %5 {strides = array<i32>} : memref<64x256xf32, #tpu.memory_space<vmem>>, vector<64x256xf32>,
    return
  }
  func.func @transform_0(%arg0: i32) -> (i32, i32) {
    %c0_i32 = arith.constant 0 : i32
    %c0_i32_0 = arith.constant 0 : i32
    return %arg0, %c0_i32 : i32, i32
  }
  func.func @transform_1(%arg0: i32) -> (i32, i32) {
    %c0_i32 = arith.constant 0 : i32
    %c0_i32_0 = arith.constant 0 : i32
    %c0_i32_1 = arith.constant 0 : i32
    return %c0_i32, %c0_i32_0 : i32, i32
  }
  func.func @transform_2(%arg0: i32) -> (i32, i32) {
    %c0_i32 = arith.constant 0 : i32
    %c0_i32_0 = arith.constant 0 : i32
    %c0_i32_1 = arith.constant 0 : i32
    return %c0_i32, %c0_i32_0 : i32, i32
  }
  func.func @transform_3(%arg0: i32) -> (i32, i32) {
    %c0_i32 = arith.constant 0 : i32
    %c0_i32_0 = arith.constant 0 : i32
    return %arg0, %c0_i32 : i32, i32
  }
}

</mosaic_0001>

<bundles_post_ra>
// kernel: tpu_custom_call.1
= control target key start
LH: loop header
LB: loop body
LE: loop exit
PB: predicated region body
PF: predicated region fallthrough
CT: control target
= control target key end

     0   :  { %v255_v5 = vmov 0.0   ;;  %s344_s0 = inlined_call_operand.vmem [shape: f32[64,24], index: 0, kind: input, shape index: {}]   ;;  %s345_s1 = inlined_call_operand.vmem [shape: f32[24,256], index: 1, kind: input, shape index: {}]   ;;  %s346_s2 = inlined_call_operand.vmem [shape: f32[1,256], index: 2, kind: input, shape index: {}]   ;;  %s347_s3 = inlined_call_operand.hbm [shape: f32[64,256], index: 3, kind: output, shape index: {}]  }
   0x1   :  { %v24_v0 = vld [vmem:[%s345_s1 + $0x8] sm:$0xff]  ;;  %v26_v1 = vld [vmem:[%s345_s1 + $0x18] sm:$0xff]  ;;  %v23_v2 = vld [vmem:[%s345_s1] sm:$0xff]  ;;  %130 = vmatprep.mubr.f32.mxu0 %v255_v5  ;;  %154 = vmatprep.mubr.f32.mxu1 %v255_v5 }
   0x2   :  { %v219_v3 = vpack.c.bf16 %v26_v1, %v24_v0  ;;  %v25_v4 = vld [vmem:[%s345_s1 + $0x10] sm:$0xff]  ;;  %v28_v7 = vld [vmem:[%s345_s1 + $0x28] sm:$0xff]  ;;  %v27_v8 = vld [vmem:[%s345_s1 + $0x20] sm:$0xff] }
   0x3   :  { %v221_v6 = vpack.c.bf16 %v25_v4, %v23_v2 }
   0x4   :  { %220 = vmatprep.subr.bf16.mxu0 %v219_v3  ;;  %223 = vmatprep.subr.bf16.mxu1 %v219_v3 }
   0x5   :  { %222 = vmatpush1.bf16.msra.mxu0 %v221_v6  ;;  %225 = vmatpush1.bf16.msra.mxu1 %v221_v6 }
   0x6   :  { %70 = vmatprep.subr.mxu0 %v28_v7  ;;  %224 = vmatprep.subr.mxu1 %v28_v7 }
   0x7   :  { %8 = vsyncpa [#allocation3], 0  ;;  %v15_v9 = vld [vmem:[%s344_s0] sm:$0xff]  ;;  %vm41_vm0 = vcmask 195584   ;;  %v16_v11 = vld [vmem:[%s344_s0 + $0x8] sm:$0xff]  ;;  %v31_v17 = vlaneseq }
   0x8   :  { %v19_v10 = vld [vmem:[%s344_s0 + $0x20] sm:$0xff]  ;;  %v20_v12 = vld [vmem:[%s344_s0 + $0x28] sm:$0xff]  ;;  %v17_v13 = vld [vmem:[%s344_s0 + $0x10] sm:$0xff] }
   0x9   :  { %71 = vmatpush1.msra.mxu0 %v27_v8  ;;  %226 = vmatpush1.msra.mxu1 %v27_v8  ;;  %v21_v14 = vld [vmem:[%s344_s0 + $0x30] sm:$0xff]  ;;  %v18_v15 = vld [vmem:[%s344_s0 + $0x18] sm:$0xff]  ;;  %v32_v18 = vshrl.u32 %v31_v17, 7  ;;  %v29_v20 = vld [vmem:[%s346_s2] sm:$0x3] }
   0xa   :  { %211 = vmatmul.mubr.msk.f32.vlgmr.msra.gmra.mrb[0].mxu0 %vm41_vm0, %v15_v9  ;;  %215 = vmatmul.mubr.msk.f32.vlgmr.msra.gmra.mrb[0].mxu1 %vm41_vm0, %v19_v10  ;;  %v22_v16 = vld [vmem:[%s344_s0 + $0x38] sm:$0xff]  ;;  %s256_s0 = smov [#allocation2]  }
   0xb   :  { %136 = vmatprep.mubr.f32.mxu0 %v255_v5  ;;  %160 = vmatprep.mubr.f32.mxu1 %v255_v5  ;;  %v33_v19 = vsub.s32 0, %v32_v18  ;;  %v37_v21 = vsub.s32 1, %v32_v18  ;;  %s200_s2 = sshll.u32 %s256_s0, 4  ;;  %s201_s2 = int_to_ptr.vmem [resolvable:$true] %s200_s2 }
   0xc   :  { %s231_s14 = scalar_lea.vmem %s201_s2, 2048  ;;  %p236_p1 = scmp.lt.s32.totalorder %s201_s2, %s201_s2 }
   0xd   :  { %v34_v22 = vrot.slane %v29_v20, %v33_v19  ;;  %v38_v23 = vrot.slane %v29_v20, %v37_v21  ;;  %p232_p0 = scmp.ne.s32.totalorder %s201_s2, %s231_s14  ;;  %p237_p2 = scmp.lt.s32.totalorder %s231_s14, %s231_s14 }
   0xe   :  { %212 = vmatmul.mubr.msk.f32.gmra.mrb[2].mxu0 %vm41_vm0, %v16_v11  ;;  %216 = vmatmul.mubr.msk.f32.gmra.mrb[2].mxu1 %vm41_vm0, %v20_v12 }
   0xf   :  { %142 = vmatprep.mubr.f32.mxu0 %v255_v5  ;;  %166 = vmatprep.mubr.f32.mxu1 %v255_v5  ;;  %p238_p3 = por %p237_p2, %p236_p1 }
  0x11   :  { %p239_p4 = pnand %p238_p3, %p232_p0 }
  0x12   :  { %213 = vmatmul.mubr.msk.f32.gmra.mrb[4].mxu0 %vm41_vm0, %v17_v13  ;;  %217 = vmatmul.mubr.msk.f32.gmra.mrb[4].mxu1 %vm41_vm0, %v21_v14 }
  0x13   :  { %148 = vmatprep.mubr.f32.mxu0 %v255_v5  ;;  %172 = vmatprep.mubr.f32.mxu1 %v255_v5 }
  0x16   :  { %214 = vmatmul.mubr.msk.f32.gmra.mrb[6].mxu0 %vm41_vm0, %v18_v15  ;;  %218 = vmatmul.mubr.msk.f32.gmra.mrb[6].mxu1 %vm41_vm0, %v22_v16 }
  0xdd   :  { %v132_v24 = vpop.f32.mrb[0].mxu0  ;;  %v156_v25 = vpop.f32.mrb[0].mxu1 }
  0xde   :  { %v133_v26 = vadd.f32 %v132_v24, %v34_v22  ;;  %v157_v27 = vadd.f32 %v156_v25, %v34_v22  ;;  %v134_v28 = vpop.f32.mrb[1].mxu0  ;;  %v158_v29 = vpop.f32.mrb[1].mxu1 }
  0xdf   :  { %v135_v30 = vadd.f32 %v134_v28, %v38_v23  ;;  %v159_v31 = vadd.f32 %v158_v29, %v38_v23 }
  0xe0   :  { %179 = vst [vmem:[#allocation2] sm:$0xff] %v133_v26  ;;  %187 = vst [vmem:[#allocation2 + $0x40] sm:$0xff] %v157_v27 }
  0xe1   :  { %180 = vst [vmem:[#allocation2 + $0x8] sm:$0xff] %v135_v30  ;;  %188 = vst [vmem:[#allocation2 + $0x48] sm:$0xff] %v159_v31  ;;  %v138_v32 = vpop.f32.mrb[2].mxu0  ;;  %v162_v33 = vpop.f32.mrb[2].mxu1 }
  0xe2   :  { %v139_v34 = vadd.f32 %v138_v32, %v34_v22  ;;  %v163_v35 = vadd.f32 %v162_v33, %v34_v22  ;;  %v140_v36 = vpop.f32.mrb[3].mxu0  ;;  %v164_v37 = vpop.f32.mrb[3].mxu1 }
  0xe3   :  { %v141_v38 = vadd.f32 %v140_v36, %v38_v23  ;;  %v165_v39 = vadd.f32 %v164_v37, %v38_v23 }
  0xe4   :  { %181 = vst [vmem:[#allocation2 + $0x10] sm:$0xff] %v139_v34  ;;  %189 = vst [vmem:[#allocation2 + $0x50] sm:$0xff] %v163_v35 }
  0xe5   :  { %182 = vst [vmem:[#allocation2 + $0x18] sm:$0xff] %v141_v38  ;;  %190 = vst [vmem:[#allocation2 + $0x58] sm:$0xff] %v165_v39  ;;  %v144_v40 = vpop.f32.mrb[4].mxu0  ;;  %v168_v41 = vpop.f32.mrb[4].mxu1 }
  0xe6   :  { %v145_v42 = vadd.f32 %v144_v40, %v34_v22  ;;  %v169_v43 = vadd.f32 %v168_v41, %v34_v22  ;;  %v146_v44 = vpop.f32.mrb[5].mxu0  ;;  %v170_v45 = vpop.f32.mrb[5].mxu1 }
  0xe7   :  { %v147_v46 = vadd.f32 %v146_v44, %v38_v23  ;;  %v171_v47 = vadd.f32 %v170_v45, %v38_v23 }
  0xe8   :  { %183 = vst [vmem:[#allocation2 + $0x20] sm:$0xff] %v145_v42  ;;  %191 = vst [vmem:[#allocation2 + $0x60] sm:$0xff] %v169_v43 }
  0xe9   :  { %184 = vst [vmem:[#allocation2 + $0x28] sm:$0xff] %v147_v46  ;;  %192 = vst [vmem:[#allocation2 + $0x68] sm:$0xff] %v171_v47  ;;  %v150_v48 = vpop.f32.mrb[6].mxu0  ;;  %v174_v49 = vpop.f32.mrb[6].mxu1 }
  0xea   :  { %v151_v50 = vadd.f32 %v150_v48, %v34_v22  ;;  %v175_v51 = vadd.f32 %v174_v49, %v34_v22  ;;  %v152_v52 = vpop.f32.mrb[7].mxu0  ;;  %v176_v53 = vpop.f32.mrb[7].mxu1 }
  0xeb   :  { %v153_v54 = vadd.f32 %v152_v52, %v38_v23  ;;  %v177_v55 = vadd.f32 %v176_v53, %v38_v23 }
  0xec   :  { %185 = vst [vmem:[#allocation2 + $0x30] sm:$0xff] %v151_v50  ;;  %193 = vst [vmem:[#allocation2 + $0x70] sm:$0xff] %v175_v51 }
  0xed   :  { %186 = vst [vmem:[#allocation2 + $0x38] sm:$0xff] %v153_v54  ;;  %194 = vst [vmem:[#allocation2 + $0x78] sm:$0xff] %v177_v55 }
  0xee   :  { %242 = shalt.err (!%p239_p4)
}
  0xef   :  { %s243_s17 = scalar_lea.hbm %s347_s3, 2048 }
  0xf0   :  { %p244_p5 = scmp.ne.s32.totalorder %s347_s3, %s243_s17  ;;  %p247_p6 = scmp.lt.u32.totalorder %s243_s17, %s347_s3 }
  0xf2   :  { %p249_p7 = pnand %p247_p6, %p244_p5 }
  0xf4   :  { %252 = shalt.err (!%p249_p7)
}
  0xf5   :  { %s257_s22 = smov 256   ;;  %s258_s23 = smov 16  }
  0xf6   :  { %206 = dma.vmem_to_hbm [thread:$0]  %s201_s2, 2048, %s347_s3, [#allocation3], %s257_s22, %s257_s22, %s258_s23  }
  0xf7   :  { %253 = dma.done.wait [#allocation3], 2048  }
  0xf8   :  { %254 = vsyncadd [#allocation3], 4294965248 }
  0xf9   :  { %210 = vsyncpa [#allocation3], 1 }

</bundles_post_ra>
